<compile_context>
chip_gen: v7x
topology: tpu7x:2x2x1
jax: 0.10.0
libtpu: 0.0.40
codegen_flags: <defaults>
</compile_context>

<pallas_src>
import jax
import jax.numpy as jnp
from jax.experimental import pallas as pl
from jax.experimental.pallas import tpu as pltpu


def _scaling_kernel(shift_ref, inv_ref, x_ref, o_ref):
    # shift_ref / inv_ref: (rb, 1) per-row constants, broadcast over lanes.
    # x_ref / o_ref:       (rb, cb) sublane/lane-dense tiles.
    o_ref[...] = (x_ref[...] - shift_ref[...]) * inv_ref[...]


def _tile_budget():
    """Per-tile byte target + scoped-VMEM limit, sized by chip generation."""
    try:
        phys_vmem = pltpu.get_tpu_info().vmem_capacity_bytes
    except Exception:
        phys_vmem = 64 << 20  # conservative (v7x-sized) fallback
    if phys_vmem <= (64 << 20):
        # v7x: 64 MiB physical VMEM. 8 MiB tiles -> 4 live buffers = 32 MiB.
        return 8 << 20, 44 << 20
    # v5e / v6e: 128 MiB physical. 4 MiB tiles -> 16 MiB live buffers.
    return 4 << 20, 48 << 20


def _choose_blocks(rows, cols, itemsize, target_bytes):
    """Pick a (row_block, col_block) tile for a (rows, cols) 2-D view.

    col_block is a multiple of 128 (lane axis) unless it is the full column
    extent; row_block is a multiple of 8 (sublane axis) unless it is the full
    row extent. Neither block has to divide the array: the grid uses cdiv and
    Pallas masks the partial tail block.
    """
    target_elems = max(8 * 128, target_bytes // itemsize)

    # Whole tensor fits in one tile: single grid step, full-extent block.
    if rows * cols <= target_elems:
        return rows, cols

    cols_padded = pl.cdiv(cols, 128) * 128
    rb = rows if rows <= 8 else 8

    # Lane block: as many full 128-lane groups as the per-tile budget allows.
    cb = min(cols_padded, max(128, (target_elems // rb) // 128 * 128))

    # If the lane axis already fits entirely, spend leftover budget on more
    # rows per step (amortizes per-grid-step overhead for small planes).
    if cb >= cols_padded and rows > 8:
        rb = min(rows, max(8, (target_elems // cols_padded) // 8 * 8))

    return rb, cb


def scaling_layer(x, shift, scale):
    """x: (N, C, H, W) float32; shift, scale: (C,). Returns (x - shift)/scale."""
    N, C, H, W = x.shape
    R, L = N * C, H * W

    # Sublane/lane-dense 2-D view: rows = (batch, channel), lanes = H*W.
    x2 = x.reshape(R, L)

    # Per-row constants, broadcast over batch: shift and 1/scale.
    shift_rows = jnp.broadcast_to(
        shift.astype(x.dtype)[None, :], (N, C)).reshape(R, 1)
    inv_rows = jnp.broadcast_to(
        (1.0 / scale).astype(x.dtype)[None, :], (N, C)).reshape(R, 1)

    target_bytes, vmem_limit = _tile_budget()
    rb, cb = _choose_blocks(R, L, x.dtype.itemsize, target_bytes)
    grid = (pl.cdiv(R, rb), pl.cdiv(L, cb))

    out2 = pl.pallas_call(
        _scaling_kernel,
        out_shape=jax.ShapeDtypeStruct((R, L), x.dtype),
        grid=grid,
        in_specs=[
            pl.BlockSpec((rb, 1), lambda i, j: (i, 0)),    # per-row shift
            pl.BlockSpec((rb, 1), lambda i, j: (i, 0)),    # per-row 1/scale
            pl.BlockSpec((rb, cb), lambda i, j: (i, j)),   # x tile
        ],
        out_specs=pl.BlockSpec((rb, cb), lambda i, j: (i, j)),
        compiler_params=pltpu.CompilerParams(
            dimension_semantics=("parallel", "parallel"),
            vmem_limit_bytes=vmem_limit,
        ),
    )(shift_rows, inv_rows, x2)

    return out2.reshape(N, C, H, W)


if __name__ == "__main__":
    key = jax.random.PRNGKey(0)
    N, C, H, W = 2, 3, 16, 16  # ScalingLayer is defined for 3 (RGB) channels
    x = jax.random.normal(key, (N, C, H, W), dtype=jnp.float32)

    # Buffers from the PyTorch module __init__ (deterministic constants).
    shift = jnp.array([-0.030, -0.088, -0.188], dtype=jnp.float32)
    scale = jnp.array([0.458, 0.448, 0.450], dtype=jnp.float32)

    out = scaling_layer(x, shift, scale)
    jax.block_until_ready(out)

    # Reference: true PyTorch semantics (x - shift) / scale. The in-kernel
    # reciprocal-multiply differs from a true divide by ~1-2 ulp.
    ref = (x - shift[None, :, None, None]) / scale[None, :, None, None]
    assert jnp.allclose(out, ref, atol=1e-6, rtol=1e-5)

    print("KERNEL_OK")
</pallas_src>

<mosaic_0001>
module attributes {stable_mosaic.version = 11 : i64} {
  func.func @_scaling_kernel(%arg0: i32, %arg1: i32, %arg2: memref<6x1xf32, #tpu.memory_space<vmem>>, %arg3: memref<6x1xf32, #tpu.memory_space<vmem>>, %arg4: memref<6x256xf32, #tpu.memory_space<vmem>>, %arg5: memref<6x256xf32, #tpu.memory_space<vmem>>) attributes {dimension_semantics = [#tpu.dimension_semantics<parallel>, #tpu.dimension_semantics<parallel>], iteration_bounds = array<i64: 1, 1>, scalar_prefetch = 0 : i64, scratch_operands = 0 : i64, tpu.core_type = #tpu.core_type<tc>, window_params = [{transform_indices = @transform_0, window_bounds = array<i64: 6, 1>}, {transform_indices = @transform_1, window_bounds = array<i64: 6, 1>}, {transform_indices = @transform_2, window_bounds = array<i64: 6, 256>}, {transform_indices = @transform_3, window_bounds = array<i64: 6, 256>}]} {
    %c0 = arith.constant 0 : index
    %c0_0 = arith.constant 0 : index
    %0 = vector.load %arg4[%c0, %c0_0] : memref<6x256xf32, #tpu.memory_space<vmem>>, vector<6x256xf32>
    %c0_1 = arith.constant 0 : index
    %c0_2 = arith.constant 0 : index
    %1 = vector.load %arg2[%c0_1, %c0_2] : memref<6x1xf32, #tpu.memory_space<vmem>>, vector<6x1xf32>
    %2 = vector.broadcast %1 : vector<6x1xf32> to vector<6x256xf32>
    %3 = arith.subf %0, %2 : vector<6x256xf32>
    %c0_3 = arith.constant 0 : index
    %c0_4 = arith.constant 0 : index
    %4 = vector.load %arg3[%c0_3, %c0_4] : memref<6x1xf32, #tpu.memory_space<vmem>>, vector<6x1xf32>
    %5 = vector.broadcast %4 : vector<6x1xf32> to vector<6x256xf32>
    %6 = arith.mulf %3, %5 : vector<6x256xf32>
    %c0_5 = arith.constant 0 : index
    %c0_6 = arith.constant 0 : index
    %7 = vector.load %arg5[%c0_5, %c0_6] : memref<6x256xf32, #tpu.memory_space<vmem>>, vector<6x256xf32>
    tpu.vector_store %arg5[%c0_5, %c0_6], %6 {strides = array<i32>} : memref<6x256xf32, #tpu.memory_space<vmem>>, vector<6x256xf32>,
    return
  }
  func.func @transform_0(%arg0: i32, %arg1: i32) -> (i32, i32) {
    %c0_i32 = arith.constant 0 : i32
    %c0_i32_0 = arith.constant 0 : i32
    return %arg0, %c0_i32 : i32, i32
  }
  func.func @transform_1(%arg0: i32, %arg1: i32) -> (i32, i32) {
    %c0_i32 = arith.constant 0 : i32
    %c0_i32_0 = arith.constant 0 : i32
    return %arg0, %c0_i32 : i32, i32
  }
  func.func @transform_2(%arg0: i32, %arg1: i32) -> (i32, i32) {
    %c0_i32 = arith.constant 0 : i32
    return %arg0, %arg1 : i32, i32
  }
  func.func @transform_3(%arg0: i32, %arg1: i32) -> (i32, i32) {
    %c0_i32 = arith.constant 0 : i32
    return %arg0, %arg1 : i32, i32
  }
}

</mosaic_0001>

<bundles_post_ra>
// kernel: tpu_custom_call.1
= control target key start
LH: loop header
LB: loop body
LE: loop exit
PB: predicated region body
PF: predicated region fallthrough
CT: control target
= control target key end

     0   :  { %v76_v1 = vmov 0   ;;  %s122_s0 = inlined_call_operand.vmem [shape: f32[6,1], index: 0, kind: input, shape index: {}]   ;;  %s123_s1 = inlined_call_operand.vmem [shape: f32[6,1], index: 1, kind: input, shape index: {}]   ;;  %s124_s2 = inlined_call_operand.vmem [shape: f32[6,256], index: 2, kind: input, shape index: {}]   ;;  %s125_s3 = inlined_call_operand.hbm [shape: f32[6,256], index: 3, kind: output, shape index: {}]  }
   0x1   :  { %v17_v0 = vld [vmem:[%s122_s0] sm:$0x3f]  ;;  %51 = vset.pattern.permute.xlu0 %v76_v1 }
   0x2   :  { %8 = vsyncpa [#allocation3], 0  ;;  %20 = vperm.xlu0 %51, %v17_v0   ;;  %v25_v2 = vld [vmem:[%s123_s1] sm:$0x3f]  ;;  %v16_v5 = vld [vmem:[%s124_s2 + $0x8] sm:$0x3f] }
   0x3   :  { %v15_v4 = vld [vmem:[%s124_s2] sm:$0x3f]  ;;  %s77_s20 = smov [#allocation2]  }
   0x4   :  { %s41_s0 = sshll.u32 %s77_s20, 4  ;;  %s42_s0 = int_to_ptr.vmem [resolvable:$true] %s41_s0 }
   0x5   :  { %s52_s1 = scalar_lea.vmem %s42_s0, 256  ;;  %p57_p1 = scmp.lt.s32.totalorder %s42_s0, %s42_s0 }
   0x6   :  { %28 = vperm.xlu0 %51, %v25_v2   ;;  %p53_p0 = scmp.ne.s32.totalorder %s42_s0, %s52_s1  ;;  %p58_p2 = scmp.lt.s32.totalorder %s52_s1, %s52_s1 }
   0x8   :  { %p59_p3 = por %p58_p2, %p57_p1 }
   0xa   :  { %p60_p4 = pnand %p59_p3, %p53_p0 }
  0x81   :  { %v21_v3 = vpop.permute.xlu0 %20 }
  0x82   :  { %v23_v6 = vsub.f32 %v15_v4, %v21_v3  ;;  %v24_v7 = vsub.f32 %v16_v5, %v21_v3 }
  0x85   :  { %v29_v8 = vpop.permute.xlu0 %28 }
  0x86   :  { %v31_v9 = vmul.f32 %v29_v8, %v23_v6  ;;  %v32_v10 = vmul.f32 %v29_v8, %v24_v7 }
  0x88   :  { %33 = vst [vmem:[#allocation2] sm:$0x3f] %v31_v9  ;;  %34 = vst [vmem:[#allocation2 + $0x8] sm:$0x3f] %v32_v10 }
  0x89   :  { %63 = shalt.err (!%p60_p4)
}
  0x8a   :  { %s64_s2 = scalar_lea.hbm %s125_s3, 256 }
  0x8b   :  { %p65_p5 = scmp.ne.s32.totalorder %s125_s3, %s64_s2  ;;  %p68_p6 = scmp.lt.u32.totalorder %s64_s2, %s125_s3 }
  0x8d   :  { %p70_p7 = pnand %p68_p6, %p65_p5 }
  0x8f   :  { %73 = shalt.err (!%p70_p7)
}
  0x90   :  { %44 = dma.vmem_to_hbm [thread:$0]  %s42_s0, 256, %s125_s3, [#allocation3]  }
  0x91   :  { %74 = dma.done.wait [#allocation3], 256  }
  0x92   :  { %75 = vsyncadd [#allocation3], 4294967040 }
  0x93   :  { %48 = vsyncpa [#allocation3], 1 }

</bundles_post_ra>
